<compile_context>
chip_gen: v5e
topology: v5e:2x2
jax: 0.10.0
libtpu: 0.0.40
codegen_flags: <defaults>
</compile_context>

<pallas_src>
import functools
import math

import jax
import jax.numpy as jnp
from jax.experimental import pallas as pl
from jax.experimental.pallas import tpu as pltpu


_LANE = 128        # pad each stream's fc3 output to a full lane block
_TB_MAX = 512      # max batch rows per grid step (safe for v7x 64 MiB VMEM)


def _dqn_kernel(x_ref, w1_ref, b1_ref, w2_ref, b2_ref, w3_ref, b3_ref,
                out_ref, *, n_actions, out_pad):
    """One batch tile of the fused dueling-DQN forward.

    x_ref : (TB, state_size)
    w1    : (state_size, n_latent),            b1: (1, n_latent)
    w2    : (n_latent, n_latent)   fc2_a|fc2_v fused along out-dim, b2: (1, n_latent)
    w3    : (n_latent, 2*out_pad)  block-diagonal fc3_a/fc3_v, zero-padded lanes
    b3    : (1, 2*out_pad)
    out   : (TB, out_pad)          lane-dense store; wrapper slices [:, :n_actions]
    """
    x = x_ref[...]

    # fc1 + relu
    h = jnp.dot(x, w1_ref[...], preferred_element_type=jnp.float32) + b1_ref[...]
    h = jnp.maximum(h, 0.0)

    # fused fc2_a | fc2_v + relu  (single matmul for both streams)
    h2 = jnp.dot(h, w2_ref[...], preferred_element_type=jnp.float32) + b2_ref[...]
    h2 = jnp.maximum(h2, 0.0)

    # fused block-diagonal fc3_a / fc3_v + relu (single matmul, padded lanes = 0)
    av = jnp.dot(h2, w3_ref[...], preferred_element_type=jnp.float32) + b3_ref[...]
    av = jnp.maximum(av, 0.0)

    a = av[:, :out_pad]   # advantage stream: valid lanes [0:n_actions], rest exactly 0
    v = av[:, out_pad:]   # value stream:     valid lanes [0:n_actions], rest exactly 0

    # Mean over the n_actions *valid* lanes only; padded lanes contribute 0 to the sum.
    a_mean = jnp.sum(a, axis=-1, keepdims=True) * (1.0 / n_actions)

    # Lanes >= n_actions hold -a_mean; they are sliced off in the wrapper.
    out_ref[...] = v + a - a_mean


def prepare_params(params, *, out_pad=_LANE):
    """One-time parameter preprocessing (NOT in the per-call hot path).

    params: PyTorch-style dict — weights (out, in), biases (out,).
    Returns (weights_tuple, meta_dict).
    """
    f32 = lambda t: jnp.asarray(t, jnp.float32)
    w1, b1 = f32(params["w1"]), f32(params["b1"])
    w2a, b2a = f32(params["w2_a"]), f32(params["b2_a"])
    w2v, b2v = f32(params["w2_v"]), f32(params["b2_v"])
    w3a, b3a = f32(params["w3_a"]), f32(params["b3_a"])
    w3v, b3v = f32(params["w3_v"]), f32(params["b3_v"])

    state_size = w1.shape[1]
    n_latent = w1.shape[0]
    n_half = w2a.shape[0]
    n_actions = w3a.shape[0]
    assert 2 * n_half == n_latent
    assert n_actions <= out_pad

    # fc1: transpose to (in, out), bias as a row
    w1_t = w1.T                                        # (state_size, n_latent)
    b1_r = b1.reshape(1, -1)                           # (1, n_latent)

    # fc2: concat the a/v streams along the output dim -> one matmul
    w2_f = jnp.concatenate([w2a.T, w2v.T], axis=1)     # (n_latent, n_latent)
    b2_f = jnp.concatenate([b2a, b2v]).reshape(1, -1)  # (1, n_latent)

    # fc3: block-diagonal (a reads h2[:, :n_half], v reads h2[:, n_half:]),
    # each stream padded to a full 128-lane block for lane-dense output stores.
    w3_f = jnp.zeros((n_latent, 2 * out_pad), jnp.float32)
    w3_f = w3_f.at[:n_half, :n_actions].set(w3a.T)
    w3_f = w3_f.at[n_half:, out_pad:out_pad + n_actions].set(w3v.T)
    b3_f = jnp.zeros((1, 2 * out_pad), jnp.float32)
    b3_f = b3_f.at[0, :n_actions].set(b3a)
    b3_f = b3_f.at[0, out_pad:out_pad + n_actions].set(b3v)

    weights = (w1_t, b1_r, w2_f, b2_f, w3_f, b3_f)
    meta = dict(state_size=state_size, n_latent=n_latent,
                n_actions=n_actions, out_pad=out_pad)
    return weights, meta


def dqn_forward(x, weights, *, n_actions, out_pad=_LANE, tb_max=_TB_MAX):
    """Dueling-DQN forward as a single batch-tiled Pallas kernel.

    x: (B, state_size) float32; weights from prepare_params().
    Returns (B, n_actions) float32.
    """
    x = jnp.asarray(x, jnp.float32)
    B, state_size = x.shape
    w1_t, b1_r, w2_f, b2_f, w3_f, b3_f = weights
    n_latent = w1_t.shape[1]

    # Batch tiling: one block if small, otherwise TB-row tiles (pad if ragged).
    if B <= tb_max:
        TB, B_pad = B, B
    else:
        TB = tb_max
        B_pad = ((B + TB - 1) // TB) * TB
    if B_pad != B:
        x = jnp.pad(x, ((0, B_pad - B), (0, 0)))
    grid = (B_pad // TB,)

    def resident(arr):  # weights/biases stay VMEM-resident across the grid
        return pl.BlockSpec(arr.shape, lambda i: (0, 0))

    kernel = functools.partial(_dqn_kernel, n_actions=n_actions, out_pad=out_pad)

    flops = 2 * B_pad * (state_size * n_latent
                         + n_latent * n_latent
                         + n_latent * 2 * out_pad)
    param_bytes = 4 * sum(int(w.size) for w in weights)
    bytes_accessed = 4 * (B_pad * state_size + B_pad * out_pad) + param_bytes

    out_padded = pl.pallas_call(
        kernel,
        out_shape=jax.ShapeDtypeStruct((B_pad, out_pad), jnp.float32),
        grid_spec=pltpu.PrefetchScalarGridSpec(
            num_scalar_prefetch=0,
            grid=grid,
            in_specs=[
                pl.BlockSpec((TB, state_size), lambda i: (i, 0)),
                resident(w1_t), resident(b1_r),
                resident(w2_f), resident(b2_f),
                resident(w3_f), resident(b3_f),
            ],
            out_specs=pl.BlockSpec((TB, out_pad), lambda i: (i, 0)),
        ),
        compiler_params=pltpu.CompilerParams(
            dimension_semantics=("parallel",)),
        cost_estimate=pl.CostEstimate(
            flops=flops, transcendentals=0, bytes_accessed=bytes_accessed),
    )(x, w1_t, b1_r, w2_f, b2_f, w3_f, b3_f)

    # Slice away batch padding and the zero-padded output lanes.
    return out_padded[:B, :n_actions]


def init_linear_params(key, in_features, out_features):
    """Deterministic init matching torch.nn.Linear default (uniform +/- 1/sqrt(in))."""
    bound = 1.0 / math.sqrt(in_features)
    kw, kb = jax.random.split(key)
    w = jax.random.uniform(kw, (out_features, in_features), jnp.float32,
                           minval=-bound, maxval=bound)
    b = jax.random.uniform(kb, (out_features,), jnp.float32,
                           minval=-bound, maxval=bound)
    return w, b


def dqn_reference(x, params):
    """Pure-JAX reference mirroring the PyTorch forward (torch-layout params)."""
    lin = lambda h, w, b: h @ w.T + b
    relu = lambda t: jnp.maximum(t, 0.0)
    h = relu(lin(x, params["w1"], params["b1"]))
    a = relu(lin(h, params["w2_a"], params["b2_a"]))
    a = relu(lin(a, params["w3_a"], params["b3_a"]))
    v = relu(lin(h, params["w2_v"], params["b2_v"]))
    v = relu(lin(v, params["w3_v"], params["b3_v"]))
    return v + a - jnp.mean(a, axis=-1, keepdims=True)


if __name__ == "__main__":
    # Small shapes consistent with DQN_Config(state_size=16, n_actions=4, n_latent=32)
    batch = 2
    state_size = 16
    n_latent = 32
    n_actions = 4

    key = jax.random.PRNGKey(0)
    k_x, k1, k2a, k2v, k3a, k3v = jax.random.split(key, 6)

    x = jax.random.normal(k_x, (batch, state_size), jnp.float32)

    w1, b1 = init_linear_params(k1, state_size, n_latent)
    w2a, b2a = init_linear_params(k2a, n_latent, n_latent // 2)
    w2v, b2v = init_linear_params(k2v, n_latent, n_latent // 2)
    w3a, b3a = init_linear_params(k3a, n_latent // 2, n_actions)
    w3v, b3v = init_linear_params(k3v, n_latent // 2, n_actions)

    params = {
        "w1": w1, "b1": b1,
        "w2_a": w2a, "b2_a": b2a,
        "w2_v": w2v, "b2_v": b2v,
        "w3_a": w3a, "b3_a": b3a,
        "w3_v": w3v, "b3_v": b3v,
    }

    # TODO(synk): NoisyLinear (config.noisy_nets=True) noise injection is not
    # implemented; this kernel covers the default nn.Linear path.

    weights, meta = prepare_params(params)           # one-time preprocessing
    out = dqn_forward(x, weights, n_actions=meta["n_actions"],
                      out_pad=meta["out_pad"])
    out = jax.block_until_ready(out)

    ref = dqn_reference(x, params)
    assert out.shape == (batch, n_actions), out.shape
    assert jnp.allclose(out, ref, atol=1e-5, rtol=1e-5), (out, ref)

    print("KERNEL_OK")
</pallas_src>

<mosaic_0001>
module attributes {stable_mosaic.version = 11 : i64} {
  func.func @_dqn_kernel(%arg0: i32, %arg1: memref<2x16xf32, #tpu.memory_space<vmem>>, %arg2: memref<16x32xf32, #tpu.memory_space<vmem>>, %arg3: memref<1x32xf32, #tpu.memory_space<vmem>>, %arg4: memref<32x32xf32, #tpu.memory_space<vmem>>, %arg5: memref<1x32xf32, #tpu.memory_space<vmem>>, %arg6: memref<32x256xf32, #tpu.memory_space<vmem>>, %arg7: memref<1x256xf32, #tpu.memory_space<vmem>>, %arg8: memref<2x128xf32, #tpu.memory_space<vmem>>) attributes {dimension_semantics = [#tpu.dimension_semantics<parallel>], iteration_bounds = array<i64: 1>, scalar_prefetch = 0 : i64, scratch_operands = 0 : i64, tpu.core_type = #tpu.core_type<tc>, window_params = [{transform_indices = @transform_0, window_bounds = array<i64: 2, 16>}, {pipeline_mode = #tpu.pipeline_mode<synchronous>, transform_indices = @transform_1, window_bounds = array<i64: 16, 32>}, {pipeline_mode = #tpu.pipeline_mode<synchronous>, transform_indices = @transform_2, window_bounds = array<i64: 1, 32>}, {pipeline_mode = #tpu.pipeline_mode<synchronous>, transform_indices = @transform_3, window_bounds = array<i64: 32, 32>}, {pipeline_mode = #tpu.pipeline_mode<synchronous>, transform_indices = @transform_4, window_bounds = array<i64: 1, 32>}, {pipeline_mode = #tpu.pipeline_mode<synchronous>, transform_indices = @transform_5, window_bounds = array<i64: 32, 256>}, {pipeline_mode = #tpu.pipeline_mode<synchronous>, transform_indices = @transform_6, window_bounds = array<i64: 1, 256>}, {transform_indices = @transform_7, window_bounds = array<i64: 2, 128>}]} {
    %c0 = arith.constant 0 : index
    %c0_0 = arith.constant 0 : index
    %0 = vector.load %arg1[%c0, %c0_0] : memref<2x16xf32, #tpu.memory_space<vmem>>, vector<2x16xf32>
    %c0_1 = arith.constant 0 : index
    %c0_2 = arith.constant 0 : index
    %1 = vector.load %arg2[%c0_1, %c0_2] : memref<16x32xf32, #tpu.memory_space<vmem>>, vector<16x32xf32>
    %cst = arith.constant dense<0.000000e+00> : vector<2x32xf32>
    %2 = tpu.matmul %0, %1, %cst {dimension_numbers = #tpu.dot_dimension_numbers<[1], [0], [0], [1], [0, 0, 1, 1], [], []>} : vector<2x16xf32>, vector<16x32xf32>, vector<2x32xf32> -> vector<2x32xf32>
    %c0_3 = arith.constant 0 : index
    %c0_4 = arith.constant 0 : index
    %3 = vector.load %arg3[%c0_3, %c0_4] : memref<1x32xf32, #tpu.memory_space<vmem>>, vector<1x32xf32>
    %4 = vector.broadcast %3 : vector<1x32xf32> to vector<2x32xf32>
    %5 = arith.addf %2, %4 : vector<2x32xf32>
    %cst_5 = arith.constant 0.000000e+00 : f32
    %6 = vector.broadcast %cst_5 : f32 to vector<2x32xf32>
    %7 = arith.maximumf %5, %6 : vector<2x32xf32>
    %c0_6 = arith.constant 0 : index
    %c0_7 = arith.constant 0 : index
    %8 = vector.load %arg4[%c0_6, %c0_7] : memref<32x32xf32, #tpu.memory_space<vmem>>, vector<32x32xf32>
    %cst_8 = arith.constant dense<0.000000e+00> : vector<2x32xf32>
    %9 = tpu.matmul %7, %8, %cst_8 {dimension_numbers = #tpu.dot_dimension_numbers<[1], [0], [0], [1], [0, 0, 1, 1], [], []>} : vector<2x32xf32>, vector<32x32xf32>, vector<2x32xf32> -> vector<2x32xf32>
    %c0_9 = arith.constant 0 : index
    %c0_10 = arith.constant 0 : index
    %10 = vector.load %arg5[%c0_9, %c0_10] : memref<1x32xf32, #tpu.memory_space<vmem>>, vector<1x32xf32>
    %11 = vector.broadcast %10 : vector<1x32xf32> to vector<2x32xf32>
    %12 = arith.addf %9, %11 : vector<2x32xf32>
    %cst_11 = arith.constant 0.000000e+00 : f32
    %13 = vector.broadcast %cst_11 : f32 to vector<2x32xf32>
    %14 = arith.maximumf %12, %13 : vector<2x32xf32>
    %c0_12 = arith.constant 0 : index
    %c0_13 = arith.constant 0 : index
    %15 = vector.load %arg6[%c0_12, %c0_13] : memref<32x256xf32, #tpu.memory_space<vmem>>, vector<32x256xf32>
    %cst_14 = arith.constant dense<0.000000e+00> : vector<2x256xf32>
    %16 = tpu.matmul %14, %15, %cst_14 {dimension_numbers = #tpu.dot_dimension_numbers<[1], [0], [0], [1], [0, 0, 1, 1], [], []>} : vector<2x32xf32>, vector<32x256xf32>, vector<2x256xf32> -> vector<2x256xf32>
    %c0_15 = arith.constant 0 : index
    %c0_16 = arith.constant 0 : index
    %17 = vector.load %arg7[%c0_15, %c0_16] : memref<1x256xf32, #tpu.memory_space<vmem>>, vector<1x256xf32>
    %18 = vector.broadcast %17 : vector<1x256xf32> to vector<2x256xf32>
    %19 = arith.addf %16, %18 : vector<2x256xf32>
    %cst_17 = arith.constant 0.000000e+00 : f32
    %20 = vector.broadcast %cst_17 : f32 to vector<2x256xf32>
    %21 = arith.maximumf %19, %20 : vector<2x256xf32>
    %22 = vector.extract_strided_slice %21 {offsets = [0, 0], sizes = [2, 128], strides = [1, 1]} : vector<2x256xf32> to vector<2x128xf32>
    %23 = vector.extract_strided_slice %21 {offsets = [0, 128], sizes = [2, 128], strides = [1, 1]} : vector<2x256xf32> to vector<2x128xf32>
    %cst_18 = arith.constant dense<0.000000e+00> : vector<2xf32>
    %24 = vector.multi_reduction <add>, %22, %cst_18 [1] : vector<2x128xf32> to vector<2xf32>
    %25 = vector.shape_cast %24 : vector<2xf32> to vector<2x1xf32>
    %cst_19 = arith.constant 2.500000e-01 : f32
    %26 = vector.broadcast %cst_19 : f32 to vector<2x1xf32>
    %27 = arith.mulf %25, %26 : vector<2x1xf32>
    %28 = arith.addf %23, %22 : vector<2x128xf32>
    %29 = vector.broadcast %27 : vector<2x1xf32> to vector<2x128xf32>
    %30 = arith.subf %28, %29 : vector<2x128xf32>
    %c0_20 = arith.constant 0 : index
    %c0_21 = arith.constant 0 : index
    %31 = vector.load %arg8[%c0_20, %c0_21] : memref<2x128xf32, #tpu.memory_space<vmem>>, vector<2x128xf32>
    tpu.vector_store %arg8[%c0_20, %c0_21], %30 {strides = array<i32>} : memref<2x128xf32, #tpu.memory_space<vmem>>, vector<2x128xf32>,
    return
  }
  func.func @transform_0(%arg0: i32) -> (i32, i32) {
    %c0_i32 = arith.constant 0 : i32
    %c0_i32_0 = arith.constant 0 : i32
    return %arg0, %c0_i32 : i32, i32
  }
  func.func @transform_1(%arg0: i32) -> (i32, i32) {
    %c0_i32 = arith.constant 0 : i32
    %c0_i32_0 = arith.constant 0 : i32
    %c0_i32_1 = arith.constant 0 : i32
    return %c0_i32, %c0_i32_0 : i32, i32
  }
  func.func @transform_2(%arg0: i32) -> (i32, i32) {
    %c0_i32 = arith.constant 0 : i32
    %c0_i32_0 = arith.constant 0 : i32
    %c0_i32_1 = arith.constant 0 : i32
    return %c0_i32, %c0_i32_0 : i32, i32
  }
  func.func @transform_3(%arg0: i32) -> (i32, i32) {
    %c0_i32 = arith.constant 0 : i32
    %c0_i32_0 = arith.constant 0 : i32
    %c0_i32_1 = arith.constant 0 : i32
    return %c0_i32, %c0_i32_0 : i32, i32
  }
  func.func @transform_4(%arg0: i32) -> (i32, i32) {
    %c0_i32 = arith.constant 0 : i32
    %c0_i32_0 = arith.constant 0 : i32
    %c0_i32_1 = arith.constant 0 : i32
    return %c0_i32, %c0_i32_0 : i32, i32
  }
  func.func @transform_5(%arg0: i32) -> (i32, i32) {
    %c0_i32 = arith.constant 0 : i32
    %c0_i32_0 = arith.constant 0 : i32
    %c0_i32_1 = arith.constant 0 : i32
    return %c0_i32, %c0_i32_0 : i32, i32
  }
  func.func @transform_6(%arg0: i32) -> (i32, i32) {
    %c0_i32 = arith.constant 0 : i32
    %c0_i32_0 = arith.constant 0 : i32
    %c0_i32_1 = arith.constant 0 : i32
    return %c0_i32, %c0_i32_0 : i32, i32
  }
  func.func @transform_7(%arg0: i32) -> (i32, i32) {
    %c0_i32 = arith.constant 0 : i32
    %c0_i32_0 = arith.constant 0 : i32
    return %arg0, %c0_i32 : i32, i32
  }
}

</mosaic_0001>

<bundles_post_ra>
// kernel: tpu_custom_call.1
= control target key start
LH: loop header
LB: loop body
LE: loop exit
PB: predicated region body
PF: predicated region fallthrough
CT: control target
= control target key end

     0   :  { %12 = vsyncpa [#allocation3], 0  ;;  %s497_s0 = inlined_call_operand.hbm [shape: f32[2,16], index: 0, kind: input, shape index: {}]   ;;  %s498_s1 = inlined_call_operand.hbm [shape: f32[16,32], index: 1, kind: input, shape index: {}]   ;;  %s499_s2 = inlined_call_operand.vmem [shape: f32[1,32], index: 2, kind: input, shape index: {}]   ;;  %s500_s3 = inlined_call_operand.hbm [shape: f32[32,32], index: 3, kind: input, shape index: {}]   ;;  %s501_s4 = inlined_call_operand.hbm [shape: f32[1,32], index: 4, kind: input, shape index: {}]   ;;  %s502_s5 = inlined_call_operand.hbm [shape: f32[32,256], index: 5, kind: input, shape index: {}]   ;;  %s503_s6 = inlined_call_operand.vmem [shape: f32[1,256], index: 6, kind: input, shape index: {}]   ;;  %s504_s7 = inlined_call_operand.hbm [shape: f32[2,128], index: 7, kind: output, shape index: {}]  }
   0x1   :  { %13 = vsyncpa [#allocation6], 0 }
   0x2   :  { %14 = vsyncpa [#allocation9], 0  ;;  %s31_s26 = sshll.u32 %s498_s1, 4  ;;  %s32_s26 = int_to_ptr.hbm [resolvable:$true] %s31_s26 }
   0x3   :  { %15 = vsyncpa [#allocation4], 0  ;;  %s420_s27 = smov [#allocation5]   ;;  %s60_s8 = sshll.u32 %s501_s4, 4  ;;  %s61_s8 = int_to_ptr.hbm [resolvable:$true] %s60_s8 }
   0x4   :  { %s33_s28 = sshll.u32 %s420_s27, 4  ;;  %s421_s9 = smov 128   ;;  %s34_s28 = int_to_ptr.vmem [resolvable:$true] %s33_s28 }
   0x5   :  { %s422_s10 = smov 8   ;;  %s423_s11 = smov [#allocation8]  }
   0x6   :  { %39 = dma.hbm_to_vmem [thread:$0]  %s32_s26, 256, %s34_s28, [#allocation6], %s421_s9, %s421_s9, %s422_s10  }
   0x7   :  { %s62_s12 = sshll.u32 %s423_s11, 4  ;;  %s21_s15 = sshll.u32 %s497_s0, 4  ;;  %s63_s12 = int_to_ptr.vmem [resolvable:$true] %s62_s12  ;;  %s22_s15 = int_to_ptr.hbm [resolvable:$true] %s21_s15 }
   0x8   :  { %65 = dma.hbm_to_vmem [thread:$0]  %s61_s8, 16, %s63_s12, [#allocation9]  }
   0x9   :  { %s46_s17 = sshll.u32 %s500_s3, 4  ;;  %s424_s18 = smov [#allocation2]   ;;  %s47_s17 = int_to_ptr.hbm [resolvable:$true] %s46_s17 }
   0xa   :  { %s23_s19 = sshll.u32 %s424_s18, 4  ;;  %s425_s4 = smov [#allocation7]   ;;  %s24_s19 = int_to_ptr.vmem [resolvable:$true] %s23_s19 }
   0xb   :  { %26 = dma.hbm_to_vmem [thread:$0]  %s22_s15, 32, %s24_s19, [#allocation3]  }
   0xc   :  { %s48_s20 = sshll.u32 %s425_s4, 4  ;;  %s70_s23 = sshll.u32 %s502_s5, 4  ;;  %s49_s20 = int_to_ptr.vmem [resolvable:$true] %s48_s20  ;;  %s71_s23 = int_to_ptr.hbm [resolvable:$true] %s70_s23 }
   0xd   :  { %54 = dma.hbm_to_vmem [thread:$0]  %s47_s17, 512, %s49_s20, [#allocation6], %s421_s9, %s421_s9, %s422_s10  }
   0xe   :  { %s426_s0 = smov [#allocation10]   ;;  %s427_s25 = smov 256  }
   0xf   :  { %s72_s24 = sshll.u32 %s426_s0, 4  ;;  %s428_s26 = smov 16   ;;  %s73_s24 = int_to_ptr.vmem [resolvable:$true] %s72_s24 }
  0x10   :  { %78 = dma.hbm_to_vmem [thread:$0]  %s71_s23, 1024, %s73_s24, [#allocation9], %s427_s25, %s427_s25, %s428_s26  }
  0x11   :  { %412 = dma.done.wait [#allocation3], 32  }
  0x12   :  { %413 = vsyncadd [#allocation3], 4294967264 }
  0x13   :  { %414 = dma.done.wait [#allocation6], 768  }
  0x14   :  { %415 = vsyncadd [#allocation6], 4294966528 }
  0x15   :  { %416 = dma.done.wait [#allocation9], 1040  }
  0x16   :  { %417 = vsyncadd [#allocation9], 4294966256  ;;  %v103_v0 = vld [vmem:[#allocation5 + $0x8] sm:$0xff]  ;;  %v102_v1 = vld [vmem:[#allocation5] sm:$0xff]  ;;  %vm108_vm0 = vcmask 130048   ;;  %vm141_vm1 = vcmask 261120  }
  0x17   :  { %126 = vmatpush.msra.mxu0 %v103_v0  ;;  %v101_v2 = vld [vmem:[#allocation2] sm:$0x3]  ;;  %v136_v3 = vld [vmem:[#allocation7 + $0x18] sm:$0xff]  ;;  %v135_v4 = vld [vmem:[#allocation7 + $0x10] sm:$0xff]  ;;  %vm225_vm2 = vcmask 1041408   ;;  %s429_s28 = smov [#allocation11]  }
  0x18   :  { %157 = vmatpush.msra.mxu1 %v136_v3  ;;  %v134_v5 = vld [vmem:[#allocation7 + $0x8] sm:$0xff]  ;;  %v133_v6 = vld [vmem:[#allocation7] sm:$0xff]  ;;  %v172_v7 = vld [vmem:[#allocation10 + $0x30] sm:$0xff]  ;;  %s238_s29 = sshll.u32 %s429_s28, 4  ;;  %s240_s9 = sshll.u32 %s504_s7, 4  ;;  %s239_s29 = int_to_ptr.vmem [resolvable:$true] %s238_s29  ;;  %s241_s9 = int_to_ptr.hbm [resolvable:$true] %s240_s9 }
  0x19   :  { %127 = vmatpush.msra.mxu0 %v102_v1  ;;  %v173_v8 = vld [vmem:[#allocation10 + $0x38] sm:$0xff]  ;;  %195 = vmatpush.msra.mxu2 %v172_v7  ;;  %v266_v9 = vld [vmem:[%s499_s2] ss:$0 sm:$0xff]  ;;  %v170_v13 = vld [vmem:[#allocation10 + $0x20] sm:$0xff] }
  0x1a   :  { %252 = vmatmul.msk.f32.vlgmr.msra.gmra.mxu0 %vm108_vm0, %v101_v2  ;;  %158 = vmatpush.msra.mxu1 %v135_v4  ;;  %v171_v14 = vld [vmem:[#allocation10 + $0x28] sm:$0xff]  ;;  %v168_v15 = vld [vmem:[#allocation10 + $0x10] sm:$0xff]  ;;  %v169_v16 = vld [vmem:[#allocation10 + $0x18] sm:$0xff] }
  0x1b   :  { %215 = vmatpush.msra.mxu3 %v173_v8  ;;  %196 = vmatpush.msra.mxu2 %v170_v13  ;;  %v166_v17 = vld [vmem:[#allocation10] sm:$0xff]  ;;  %v167_v18 = vld [vmem:[#allocation10 + $0x8] sm:$0xff]  ;;  %v267_v19 = vld [vmem:[#allocation8] ss:$0 sm:$0xff] }
  0x1c   :  { %159 = vmatpush.msra.mxu1 %v134_v5  ;;  %v174_v23 = vld [vmem:[%s503_s6] sm:$0x3] }
  0x1d   :  { %216 = vmatpush.msra.mxu3 %v171_v14  ;;  %197 = vmatpush.msra.mxu2 %v168_v15  ;;  %v176_v24 = vperm.slane %v174_v23, 0  ;;  %v177_v29 = vperm.slane %v174_v23, 1 }
  0x1e   :  { %160 = vmatpush.msra.mxu1 %v133_v6 }
  0x1f   :  { %217 = vmatpush.msra.mxu3 %v169_v16  ;;  %198 = vmatpush.msra.mxu2 %v166_v17 }
  0x21   :  { %218 = vmatpush.msra.mxu3 %v167_v18 }
  0x97   :  { %v129_v10 = vpop.f32.mrf.mxu0 }
  0x98   :  { %v130_v11 = vadd.f32 %v266_v9, %v129_v10 }
  0x9a   :  { %v132_v12 = vmax.f32 %v130_v11, 0.0 }
  0x9c   :  { %253 = vmatmul.msk.f32.vlgmr.msra.gmra.mxu1 %vm141_vm1, %v132_v12 }
 0x119   :  { %v162_v20 = vpop.f32.mrf.mxu1 }
 0x11a   :  { %v163_v21 = vadd.f32 %v267_v19, %v162_v20 }
 0x11c   :  { %v165_v22 = vmax.f32 %v163_v21, 0.0 }
 0x11e   :  { %254 = vmatmul.msk.f32.vlgmr.msra.gmra.mxu2 %vm141_vm1, %v165_v22  ;;  %255 = vmatmul.msk.f32.vlgmr.msra.gmra.mxu3 %vm141_vm1, %v165_v22 }
 0x1a1   :  { %v200_v25 = vpop.f32.mrf.mxu2  ;;  %v220_v30 = vpop.f32.mrf.mxu3 }
 0x1a2   :  { %v201_v26 = vadd.f32 %v200_v25, %v176_v24  ;;  %v221_v31 = vadd.f32 %v220_v30, %v177_v29 }
 0x1a4   :  { %v223_v27 = vmax.f32 %v201_v26, 0.0  ;;  %v224_v32 = vmax.f32 %v221_v31, 0.0 }
 0x1a6   :  { %v226_v28 = vsel %vm225_vm2, %v223_v27, 0.0  ;;  %v230_v34 = vadd.f32 %v224_v32, %v223_v27 }
 0x1a7   :  { %227 = vadd.xlane.f32.xlu0 %v226_v28 }
 0x21a   :  { %v228_v33 = vpop.xlane.xlu0 %227 }
 0x21b   :  { %v229_v35 = vmul.f32 0.25, %v228_v33 }
 0x21d   :  { %v231_v36 = vsub.f32 %v230_v34, %v229_v35 }
 0x21f   :  { %232 = vst [vmem:[#allocation11] sm:$0x3] %v231_v36 }
 0x220   :  { %243 = dma.vmem_to_hbm [thread:$0]  %s239_s29, 32, %s241_s9, [#allocation4]  }
 0x221   :  { %418 = dma.done.wait [#allocation4], 32  }
 0x222   :  { %419 = vsyncadd [#allocation4], 4294967264 }
 0x223   :  { %248 = vsyncpa [#allocation3], 1 }
 0x224   :  { %249 = vsyncpa [#allocation6], 1 }
 0x225   :  { %250 = vsyncpa [#allocation9], 1 }
 0x226   :  { %251 = vsyncpa [#allocation4], 1 }

</bundles_post_ra>
